<compile_context>
chip_gen: v7x
topology: tpu7x:2x2x1
jax: 0.10.0
libtpu: 0.0.40
codegen_flags: <defaults>
</compile_context>

<pallas_src>
import functools

import jax
import jax.numpy as jnp
from jax.experimental import pallas as pl
from jax.experimental.pallas import tpu as pltpu


_MIB = 1024 * 1024
_VMEM_FLOOR = 32 * _MIB        # scoped default on all generations
_VMEM_CAP = 48 * _MIB          # stay well inside v7x's 64 MiB physical VMEM
_X_RESIDENT_LIMIT = 16 * _MIB  # node-feature residency gate (safe everywhere)


def _round_up(x, m):
    return ((x + m - 1) // m) * m


def _pad2(a, rows, cols):
    return jnp.pad(a, ((0, rows - a.shape[0]), (0, cols - a.shape[1])))


def _vmem_limit(footprint_bytes):
    return int(min(_VMEM_CAP, max(_VMEM_FLOOR, footprint_bytes + 4 * _MIB)))


def _choose_tiling(n):
    """Row tile tm, reduction tile tk (multiple of tm, <=1024), padded node dim."""
    tm = 128 if n <= 128 else 256
    n_p = _round_up(n, tm)
    m = n_p // tm
    c = 1
    for cand in range(1, m + 1):
        if m % cand == 0 and cand * tm <= 1024:
            c = cand
    return tm, c * tm, n_p


# ---------------------------------------------------------------------------
# Kernels
# ---------------------------------------------------------------------------
def transform_kernel(x_ref, w_ref, *rest, apply_bias, apply_relu):
    """Per-node transform: Y = [relu](X @ W [+ b]). bf16 operands, f32 MXU acc."""
    if apply_bias:
        b_ref, o_ref = rest
    else:
        (o_ref,) = rest
    r = jnp.dot(x_ref[...], w_ref[...], preferred_element_type=jnp.float32)
    if apply_bias:
        r = r + b_ref[...]
    if apply_relu:
        r = jnp.maximum(r, 0.0)
    o_ref[...] = r.astype(o_ref.dtype)


def propagate_kernel(*refs, tk, x_resident, apply_bias, apply_relu):
    """Aggregation: acc += A[i,k] @ X[k]; finalize [relu](acc [+ b])."""
    if apply_bias:
        a_ref, x_ref, b_ref, o_ref, acc_ref = refs
    else:
        a_ref, x_ref, o_ref, acc_ref = refs
        b_ref = None
    k = pl.program_id(1)

    @pl.when(k == 0)
    def _():
        acc_ref[...] = jnp.zeros_like(acc_ref)

    if x_resident:
        koff = pl.multiple_of(k * tk, tk)
        x_blk = x_ref[pl.ds(koff, tk), :]
    else:
        x_blk = x_ref[...]

    acc_ref[...] += jnp.dot(a_ref[...], x_blk, preferred_element_type=jnp.float32)

    @pl.when(k == pl.num_programs(1) - 1)
    def _():
        r = acc_ref[...]
        if apply_bias:
            r = r + b_ref[...]
        if apply_relu:
            r = jnp.maximum(r, 0.0)
        o_ref[...] = r.astype(o_ref.dtype)


def pool_linear_kernel(p_ref, h_ref, wl_ref, bl_ref, o_ref, acc_ref):
    """global_mean_pool + Linear: pooled += P[:,k] @ H[k]; out = pooled @ WL + bl."""
    k = pl.program_id(0)

    @pl.when(k == 0)
    def _():
        acc_ref[...] = jnp.zeros_like(acc_ref)

    acc_ref[...] += jnp.dot(p_ref[...], h_ref[...],
                            preferred_element_type=jnp.float32)

    @pl.when(k == pl.num_programs(0) - 1)
    def _():
        o_ref[...] = (jnp.dot(acc_ref[...], wl_ref[...],
                              preferred_element_type=jnp.float32)
                      + bl_ref[...])


# ---------------------------------------------------------------------------
# pallas_call wrappers
# ---------------------------------------------------------------------------
def _transform(x, w, b=None, relu=False, tm=256):
    n_p, f_p = x.shape
    h_p = w.shape[1]
    in_specs = [
        pl.BlockSpec((tm, f_p), lambda i: (i, 0)),       # X row block (streamed)
        pl.BlockSpec((f_p, h_p), lambda i: (0, 0)),      # W (bf16, resident)
    ]
    args = [x, w]
    if b is not None:
        in_specs.append(pl.BlockSpec((1, h_p), lambda i: (0, 0)))
        args.append(b)

    footprint = (2 * tm * f_p * 2 + f_p * h_p * 2 + 2 * tm * h_p * 2 + h_p * 4)
    cost = pl.CostEstimate(
        flops=2 * n_p * f_p * h_p, transcendentals=0,
        bytes_accessed=n_p * f_p * 2 + f_p * h_p * 2 + n_p * h_p * 2)

    kern = functools.partial(transform_kernel,
                             apply_bias=b is not None, apply_relu=relu)
    return pl.pallas_call(
        kern,
        out_shape=jax.ShapeDtypeStruct((n_p, h_p), jnp.bfloat16),
        grid_spec=pltpu.PrefetchScalarGridSpec(
            num_scalar_prefetch=0,
            grid=(n_p // tm,),
            in_specs=in_specs,
            out_specs=pl.BlockSpec((tm, h_p), lambda i: (i, 0)),
        ),
        compiler_params=pltpu.CompilerParams(
            dimension_semantics=("parallel",),
            vmem_limit_bytes=_vmem_limit(footprint)),
        cost_estimate=cost,
    )(*args)


def _propagate(a, x, b=None, relu=False, tm=256, tk=256):
    n_p = a.shape[0]
    width = x.shape[1]
    x_bytes = n_p * width * x.dtype.itemsize
    resident = x_bytes <= _X_RESIDENT_LIMIT

    in_specs = [pl.BlockSpec((tm, tk), lambda i, k: (i, k))]        # A_hat (streamed)
    if resident:
        in_specs.append(pl.BlockSpec((n_p, width), lambda i, k: (0, 0)))   # X resident
    else:
        in_specs.append(pl.BlockSpec((tk, width), lambda i, k: (k, 0)))    # X streamed
    args = [a, x]
    if b is not None:
        in_specs.append(pl.BlockSpec((1, width), lambda i, k: (0, 0)))
        args.append(b)

    a_tile = tm * tk * a.dtype.itemsize
    x_foot = 2 * x_bytes if resident else 2 * tk * width * x.dtype.itemsize
    footprint = (2 * a_tile + x_foot + 2 * tm * width * 2
                 + tm * width * 4 + width * 4)
    x_hbm = x_bytes if resident else (n_p // tm) * n_p * width * x.dtype.itemsize
    cost = pl.CostEstimate(
        flops=2 * n_p * n_p * width, transcendentals=0,
        bytes_accessed=n_p * n_p * a.dtype.itemsize + x_hbm + n_p * width * 2)

    kern = functools.partial(propagate_kernel, tk=tk, x_resident=resident,
                             apply_bias=b is not None, apply_relu=relu)
    return pl.pallas_call(
        kern,
        out_shape=jax.ShapeDtypeStruct((n_p, width), jnp.bfloat16),
        grid_spec=pltpu.PrefetchScalarGridSpec(
            num_scalar_prefetch=0,
            grid=(n_p // tm, n_p // tk),
            in_specs=in_specs,
            out_specs=pl.BlockSpec((tm, width), lambda i, k: (i, 0)),
            scratch_shapes=[pltpu.VMEM((tm, width), jnp.float32)],
        ),
        compiler_params=pltpu.CompilerParams(
            dimension_semantics=("parallel", "arbitrary"),
            vmem_limit_bytes=_vmem_limit(footprint)),
        cost_estimate=cost,
    )(*args)


def _pool_linear(p, h, wl, bl, tk):
    g_p, n_p = p.shape
    h_p = h.shape[1]
    o_p = wl.shape[1]
    footprint = (2 * g_p * tk * 2 + 2 * tk * h_p * 2 + h_p * o_p * 4
                 + g_p * h_p * 4 + g_p * o_p * 4)
    cost = pl.CostEstimate(
        flops=2 * g_p * n_p * h_p + 2 * g_p * h_p * o_p, transcendentals=0,
        bytes_accessed=g_p * n_p * 2 + n_p * h_p * 2 + h_p * o_p * 4 + g_p * o_p * 4)
    return pl.pallas_call(
        pool_linear_kernel,
        out_shape=jax.ShapeDtypeStruct((g_p, o_p), jnp.float32),
        grid_spec=pltpu.PrefetchScalarGridSpec(
            num_scalar_prefetch=0,
            grid=(n_p // tk,),
            in_specs=[
                pl.BlockSpec((g_p, tk), lambda k: (0, k)),       # pool matrix (streamed)
                pl.BlockSpec((tk, h_p), lambda k: (k, 0)),       # node features (streamed)
                pl.BlockSpec((h_p, o_p), lambda k: (0, 0)),      # Linear W (resident)
                pl.BlockSpec((1, o_p), lambda k: (0, 0)),        # Linear b (resident)
            ],
            out_specs=pl.BlockSpec((g_p, o_p), lambda k: (0, 0)),
            scratch_shapes=[pltpu.VMEM((g_p, h_p), jnp.float32)],
        ),
        compiler_params=pltpu.CompilerParams(
            dimension_semantics=("arbitrary",),
            vmem_limit_bytes=_vmem_limit(footprint)),
        cost_estimate=cost,
    )(p, h, wl, bl)


def _gcn_conv(a, x, w_bf, b, tm, tk):
    """One GCNConv + ReLU, picking the cheaper ordering (like PyG's flow)."""
    f_p, h_p = w_bf.shape
    if h_p <= f_p:
        # Transform first: X' = X @ W, then relu(A_hat @ X' + b).
        xw = _transform(x, w_bf, b=None, relu=False, tm=tm)
        return _propagate(a, xw, b=b, relu=True, tm=tm, tk=tk)
    # Aggregate first: AX = A_hat @ X, then relu(AX @ W + b).
    ax = _propagate(a, x, b=None, relu=False, tm=tm, tk=tk)
    return _transform(ax, w_bf, b=b, relu=True, tm=tm)


# ---------------------------------------------------------------------------
# Graph glue (plain JAX) + forward pass
# ---------------------------------------------------------------------------
def _build_graph_operators(n, edge_index, batch, num_graphs):
    """Dense normalized adjacency (with remaining self-loops) + mean-pool matrix."""
    row, col = edge_index[0], edge_index[1]
    # add_remaining_self_loops semantics: drop existing self-loops, add fresh ones.
    ew = jnp.where(row == col, 0.0, 1.0).astype(jnp.float32)
    idx = jnp.arange(n, dtype=edge_index.dtype)
    row = jnp.concatenate([row, idx])
    col = jnp.concatenate([col, idx])
    ew = jnp.concatenate([ew, jnp.ones((n,), jnp.float32)])

    deg = jnp.zeros((n,), jnp.float32).at[col].add(ew)
    dinv = jnp.where(deg > 0, deg ** -0.5, 0.0)
    norm = dinv[row] * dinv[col] * ew
    a_hat = jnp.zeros((n, n), jnp.float32).at[col, row].add(norm)

    counts = jnp.zeros((num_graphs,), jnp.float32).at[batch].add(1.0)
    onehot = (batch[None, :] == jnp.arange(num_graphs)[:, None]).astype(jnp.float32)
    p = onehot / jnp.maximum(counts[:, None], 1.0)
    return a_hat, p


def gcn_regressor_forward(x, edge_index, batch, params, num_graphs):
    """x: [N, F_in] f32; edge_index: [2, E] i32; batch: [N] i32 graph ids."""
    w1, b1, w2, b2, wl, bl = params
    n, f_in = x.shape
    hidden = w1.shape[1]
    out_dim = wl.shape[1]

    a_hat, p = _build_graph_operators(n, edge_index, batch, num_graphs)

    tm, tk, n_p = _choose_tiling(n)
    f_p = _round_up(f_in, 128)
    h_p = _round_up(hidden, 128)
    o_p = _round_up(out_dim, 128)
    g_p = _round_up(num_graphs, 8)

    a_bf = _pad2(a_hat, n_p, n_p).astype(jnp.bfloat16)
    x_bf = _pad2(x, n_p, f_p).astype(jnp.bfloat16)
    p_bf = _pad2(p, g_p, n_p).astype(jnp.bfloat16)
    w1_bf = _pad2(w1, f_p, h_p).astype(jnp.bfloat16)
    w2_bf = _pad2(w2, h_p, h_p).astype(jnp.bfloat16)
    wl_p = _pad2(wl, h_p, o_p)                                   # f32 (tiny)
    b1_p = jnp.pad(b1, (0, h_p - hidden)).reshape(1, h_p).astype(jnp.float32)
    b2_p = jnp.pad(b2, (0, h_p - hidden)).reshape(1, h_p).astype(jnp.float32)
    bl_p = jnp.pad(bl, (0, o_p - out_dim)).reshape(1, o_p).astype(jnp.float32)

    h1 = _gcn_conv(a_bf, x_bf, w1_bf, b1_p, tm, tk)     # bf16 [n_p, h_p]
    h2 = _gcn_conv(a_bf, h1, w2_bf, b2_p, tm, tk)       # bf16 [n_p, h_p]
    out = _pool_linear(p_bf, h2, wl_p, bl_p, tk)        # f32  [g_p, o_p]
    return out[:num_graphs, :out_dim]


# ---------------------------------------------------------------------------
# Pure-JAX references
# ---------------------------------------------------------------------------
def _reference(x, edge_index, batch, params, num_graphs, emulate_bf16=True):
    a_hat, p = _build_graph_operators(x.shape[0], edge_index, batch, num_graphs)
    w1, b1, w2, b2, wl, bl = params

    if not emulate_bf16:
        h1 = jnp.maximum((a_hat @ x) @ w1 + b1, 0.0)
        h2 = jnp.maximum((a_hat @ h1) @ w2 + b2, 0.0)
        return (p @ h2) @ wl + bl

    c = lambda v: v.astype(jnp.bfloat16).astype(jnp.float32)

    def conv(xx, w, b):
        f_p = _round_up(w.shape[0], 128)
        h_p = _round_up(w.shape[1], 128)
        if h_p <= f_p:                       # same ordering as the kernel
            xw = c(c(xx) @ c(w))
            return jnp.maximum(c(a_hat) @ xw + b, 0.0)
        ax = c(c(a_hat) @ c(xx))
        return jnp.maximum(ax @ c(w) + b, 0.0)

    h1 = conv(x, w1, b1)
    h2 = conv(h1, w2, b2)
    return (c(p) @ c(h2)) @ wl + bl


if __name__ == "__main__":
    key = jax.random.PRNGKey(0)
    num_nodes, input_dim, hidden_dim, output_dim, num_graphs = 16, 8, 32, 4, 2
    ks = jax.random.split(key, 4)

    x = jax.random.normal(ks[0], (num_nodes, input_dim), jnp.float32)

    # two chain graphs of 8 nodes each, undirected edges
    src, dst = [], []
    nodes_per_graph = num_nodes // num_graphs
    for g in range(num_graphs):
        base = g * nodes_per_graph
        for i in range(nodes_per_graph - 1):
            src += [base + i, base + i + 1]
            dst += [base + i + 1, base + i]
    edge_index = jnp.array([src, dst], dtype=jnp.int32)
    batch = jnp.repeat(jnp.arange(num_graphs, dtype=jnp.int32), nodes_per_graph)

    def glorot(k, shape):
        fan_in, fan_out = shape
        lim = (6.0 / (fan_in + fan_out)) ** 0.5
        return jax.random.uniform(k, shape, jnp.float32, -lim, lim)

    w1 = glorot(ks[1], (input_dim, hidden_dim))
    b1 = jnp.zeros((hidden_dim,), jnp.float32)
    w2 = glorot(ks[2], (hidden_dim, hidden_dim))
    b2 = jnp.zeros((hidden_dim,), jnp.float32)
    wl = glorot(ks[3], (hidden_dim, output_dim))
    bl = jnp.zeros((output_dim,), jnp.float32)
    params = (w1, b1, w2, b2, wl, bl)

    out = jax.block_until_ready(
        gcn_regressor_forward(x, edge_index, batch, params, num_graphs))
    ref_bf16 = _reference(x, edge_index, batch, params, num_graphs, emulate_bf16=True)
    ref_f32 = _reference(x, edge_index, batch, params, num_graphs, emulate_bf16=False)

    assert out.shape == (num_graphs, output_dim)
    # Tight check vs a reference that mirrors the kernel's bf16 casts & ordering.
    assert jnp.allclose(out, ref_bf16, atol=5e-3, rtol=5e-3), (out, ref_bf16)
    # Loose check vs the exact f32 GCN math (bf16 quantization is the only delta).
    assert jnp.allclose(out, ref_f32, atol=5e-2, rtol=5e-2), (out, ref_f32)
    print("KERNEL_OK")
</pallas_src>

<mosaic_0001>
module attributes {stable_mosaic.version = 11 : i64} {
  func.func @transform_kernel(%arg0: i32, %arg1: memref<128x128xbf16, #tpu.memory_space<vmem>>, %arg2: memref<128x128xbf16, #tpu.memory_space<vmem>>, %arg3: memref<128x128xbf16, #tpu.memory_space<vmem>>) attributes {dimension_semantics = [#tpu.dimension_semantics<parallel>], iteration_bounds = array<i64: 1>, scalar_prefetch = 0 : i64, scratch_operands = 0 : i64, tpu.core_type = #tpu.core_type<tc>, window_params = [{transform_indices = @transform_0, window_bounds = array<i64: 128, 128>}, {pipeline_mode = #tpu.pipeline_mode<synchronous>, transform_indices = @transform_1, window_bounds = array<i64: 128, 128>}, {transform_indices = @transform_2, window_bounds = array<i64: 128, 128>}]} {
    %c0 = arith.constant 0 : index
    %c0_0 = arith.constant 0 : index
    %0 = vector.load %arg1[%c0, %c0_0] : memref<128x128xbf16, #tpu.memory_space<vmem>>, vector<128x128xbf16>
    %c0_1 = arith.constant 0 : index
    %c0_2 = arith.constant 0 : index
    %1 = vector.load %arg2[%c0_1, %c0_2] : memref<128x128xbf16, #tpu.memory_space<vmem>>, vector<128x128xbf16>
    %cst = arith.constant dense<0.000000e+00> : vector<128x128xf32>
    %2 = tpu.matmul %0, %1, %cst {dimension_numbers = #tpu.dot_dimension_numbers<[1], [0], [0], [1], [0, 0, 1, 1], [], []>} : vector<128x128xbf16>, vector<128x128xbf16>, vector<128x128xf32> -> vector<128x128xf32>
    %3 = arith.truncf %2 : vector<128x128xf32> to vector<128x128xbf16>
    %c0_3 = arith.constant 0 : index
    %c0_4 = arith.constant 0 : index
    %4 = vector.load %arg3[%c0_3, %c0_4] : memref<128x128xbf16, #tpu.memory_space<vmem>>, vector<128x128xbf16>
    tpu.vector_store %arg3[%c0_3, %c0_4], %3 {strides = array<i32>} : memref<128x128xbf16, #tpu.memory_space<vmem>>, vector<128x128xbf16>,
    return
  }
  func.func @transform_0(%arg0: i32) -> (i32, i32) {
    %c0_i32 = arith.constant 0 : i32
    %c0_i32_0 = arith.constant 0 : i32
    return %arg0, %c0_i32 : i32, i32
  }
  func.func @transform_1(%arg0: i32) -> (i32, i32) {
    %c0_i32 = arith.constant 0 : i32
    %c0_i32_0 = arith.constant 0 : i32
    %c0_i32_1 = arith.constant 0 : i32
    return %c0_i32, %c0_i32_0 : i32, i32
  }
  func.func @transform_2(%arg0: i32) -> (i32, i32) {
    %c0_i32 = arith.constant 0 : i32
    %c0_i32_0 = arith.constant 0 : i32
    return %arg0, %c0_i32 : i32, i32
  }
}

</mosaic_0001>

<bundles_post_ra>
// kernel: tpu_custom_call.1
= control target key start
LH: loop header
LB: loop body
LE: loop exit
PB: predicated region body
PF: predicated region fallthrough
CT: control target
= control target key end

     0   :  { %7 = vsyncpa [#allocation3], 0  ;;  %s681_s0 = inlined_call_operand.hbm [shape: bf16[128,128], index: 0, kind: input, shape index: {}]   ;;  %s682_s1 = inlined_call_operand.hbm [shape: bf16[128,128], index: 1, kind: input, shape index: {}]   ;;  %s683_s2 = inlined_call_operand.hbm [shape: bf16[128,128], index: 2, kind: output, shape index: {}]  }
   0x1   :  { %8 = vsyncpa [#allocation6], 0 }
   0x2   :  { %9 = vsyncpa [#allocation4], 0  ;;  %s616_s9 = smov [#allocation2]   ;;  %s544_s13 = scalar_lea.hbm %s681_s0, 1024 }
   0x3   :  { %s15_s10 = sshll.u32 %s616_s9, 4  ;;  %p545_p0 = scmp.ne.s32.totalorder %s681_s0, %s544_s13  ;;  %s16_s10 = int_to_ptr.vmem [resolvable:$true] %s15_s10 }
   0x4   :  { %p548_p1 = scmp.lt.u32.totalorder %s544_s13, %s681_s0 }
   0x6   :  { %p550_p2 = pnand %p548_p1, %p545_p0 }
   0x8   :  { %553 = shalt.err (!%p550_p2)
}
   0x9   :  { %s554_s18 = scalar_lea.vmem %s16_s10, 1024  ;;  %p559_p4 = scmp.lt.s32.totalorder %s16_s10, %s16_s10 }
   0xa   :  { %p555_p3 = scmp.ne.s32.totalorder %s16_s10, %s554_s18  ;;  %p560_p5 = scmp.lt.s32.totalorder %s554_s18, %s554_s18 }
   0xc   :  { %p561_p6 = por %p560_p5, %p559_p4 }
   0xe   :  { %p562_p7 = pnand %p561_p6, %p555_p3 }
  0x10   :  { %565 = shalt.err (!%p562_p7)
}
  0x11   :  { %s617_s19 = smov 64   ;;  %s618_s20 = smov 4  }
  0x12   :  { %21 = dma.hbm_to_vmem [thread:$0]  %s681_s0, 1024, %s16_s10, [#allocation3], %s617_s19, %s617_s19, %s618_s20  }
  0x13   :  { %s619_s23 = smov [#allocation5]   ;;  %s566_s27 = scalar_lea.hbm %s682_s1, 1024 }
  0x14   :  { %s27_s24 = sshll.u32 %s619_s23, 4  ;;  %p567_p8 = scmp.ne.s32.totalorder %s682_s1, %s566_s27  ;;  %s28_s24 = int_to_ptr.vmem [resolvable:$true] %s27_s24 }
  0x15   :  { %p570_p9 = scmp.lt.u32.totalorder %s566_s27, %s682_s1 }
  0x17   :  { %p572_p10 = pnand %p570_p9, %p567_p8 }
  0x19   :  { %575 = shalt.err (!%p572_p10)
}
  0x1a   :  { %s576_s4 = scalar_lea.vmem %s28_s24, 1024  ;;  %p581_p12 = scmp.lt.s32.totalorder %s28_s24, %s28_s24 }
  0x1b   :  { %p577_p11 = scmp.ne.s32.totalorder %s28_s24, %s576_s4  ;;  %p582_p13 = scmp.lt.s32.totalorder %s576_s4, %s576_s4 }
  0x1d   :  { %p583_p0 = por %p582_p13, %p581_p12 }
  0x1f   :  { %p584_p1 = pnand %p583_p0, %p577_p11 }
  0x21   :  { %587 = shalt.err (!%p584_p1)
}
  0x22   :  { %33 = dma.hbm_to_vmem [thread:$0]  %s682_s1, 1024, %s28_s24, [#allocation6], %s617_s19, %s617_s19, %s618_s20  }
  0x23   :  { %610 = dma.done.wait [#allocation3], 1024  }
  0x24   :  { %611 = vsyncadd [#allocation3], 4294966272 }
  0x25   :  { %612 = dma.done.wait [#allocation6], 1024  }
  0x26   :  { %613 = vsyncadd [#allocation6], 4294966272  ;;  %v528_v0 = vld [vmem:[#allocation5] sm:$0xff]   ;;  %v529_v1 = vld [vmem:[#allocation5 + $0x8] sm:$0xff]   ;;  %s620_s1 = smov [#allocation7]  }
  0x27   :  { %475 = vmatprep.subr.bf16.mxu0 %v528_v0  ;;  %507 = vmatprep.subr.bf16.mxu1 %v528_v0  ;;  %v530_v2 = vld [vmem:[#allocation5 + $0x10] sm:$0xff]   ;;  %v531_v3 = vld [vmem:[#allocation5 + $0x18] sm:$0xff]   ;;  %v536_v4 = vld [vmem:[#allocation2] sm:$0xff]   ;;  %s351_s6 = sshll.u32 %s620_s1, 4  ;;  %s352_s6 = int_to_ptr.vmem [resolvable:$true] %s351_s6 }
  0x28   :  { %476 = vmatpush3.bf16.msra.mxu0 %v528_v0  ;;  %515 = vmatpush3.bf16.msra.mxu1 %v528_v0  ;;  %v537_v5 = vld [vmem:[#allocation2 + $0x20] sm:$0xff]   ;;  %v533_v7 = vld [vmem:[#allocation5 + $0x28] sm:$0xff]   ;;  %v534_v8 = vld [vmem:[#allocation5 + $0x30] sm:$0xff]   ;;  %s588_s7 = scalar_lea.vmem %s352_s6, 1024  ;;  %p593_p3 = scmp.lt.s32.totalorder %s352_s6, %s352_s6 }
  0x29   :  { %477 = vmatprep.subr.bf16.mxu0 %v529_v1  ;;  %508 = vmatprep.subr.bf16.mxu1 %v529_v1  ;;  %v532_v6 = vld [vmem:[#allocation5 + $0x20] sm:$0xff]   ;;  %v535_v9 = vld [vmem:[#allocation5 + $0x38] sm:$0xff]   ;;  %v538_v10 = vld [vmem:[#allocation2 + $0x8] sm:$0xff]   ;;  %p589_p2 = scmp.ne.s32.totalorder %s352_s6, %s588_s7  ;;  %p594_p4 = scmp.lt.s32.totalorder %s588_s7, %s588_s7 }
  0x2a   :  { %491 = vmatprep.mubr.bf16.mxu0 %v536_v4  ;;  %499 = vmatprep.mubr.bf16.mxu1 %v537_v5  ;;  %v539_v11 = vld [vmem:[#allocation2 + $0x28] sm:$0xff]   ;;  %v540_v12 = vld [vmem:[#allocation2 + $0x10] sm:$0xff]   ;;  %v542_v14 = vld [vmem:[#allocation2 + $0x18] sm:$0xff]  }
  0x2b   :  { %v541_v13 = vld [vmem:[#allocation2 + $0x30] sm:$0xff]   ;;  %v543_v15 = vld [vmem:[#allocation2 + $0x38] sm:$0xff]   ;;  %p595_p5 = por %p594_p4, %p593_p3 }
  0x2c   :  { %478 = vmatpush3.bf16.msra.mxu0 %v529_v1  ;;  %516 = vmatpush3.bf16.msra.mxu1 %v529_v1 }
  0x2d   :  { %479 = vmatprep.subr.bf16.mxu0 %v530_v2  ;;  %509 = vmatprep.subr.bf16.mxu1 %v530_v2  ;;  %p596_p6 = pnand %p595_p5, %p589_p2 }
  0x30   :  { %480 = vmatpush3.bf16.msra.mxu0 %v530_v2  ;;  %517 = vmatpush3.bf16.msra.mxu1 %v530_v2 }
  0x31   :  { %481 = vmatprep.subr.bf16.mxu0 %v531_v3  ;;  %510 = vmatprep.subr.bf16.mxu1 %v531_v3 }
  0x34   :  { %482 = vmatpush3.bf16.msra.mxu0 %v531_v3  ;;  %518 = vmatpush3.bf16.msra.mxu1 %v531_v3 }
  0x35   :  { %483 = vmatprep.subr.bf16.mxu0 %v532_v6  ;;  %511 = vmatprep.subr.bf16.mxu1 %v532_v6 }
  0x38   :  { %484 = vmatpush3.bf16.msra.mxu0 %v532_v6  ;;  %519 = vmatpush3.bf16.msra.mxu1 %v532_v6 }
  0x39   :  { %485 = vmatprep.subr.bf16.mxu0 %v533_v7  ;;  %512 = vmatprep.subr.bf16.mxu1 %v533_v7 }
  0x3c   :  { %486 = vmatpush3.bf16.msra.mxu0 %v533_v7  ;;  %520 = vmatpush3.bf16.msra.mxu1 %v533_v7 }
  0x3d   :  { %487 = vmatprep.subr.bf16.mxu0 %v534_v8  ;;  %513 = vmatprep.subr.bf16.mxu1 %v534_v8 }
  0x40   :  { %488 = vmatpush3.bf16.msra.mxu0 %v534_v8  ;;  %521 = vmatpush3.bf16.msra.mxu1 %v534_v8 }
  0x41   :  { %489 = vmatprep.subr.bf16.mxu0 %v535_v9  ;;  %514 = vmatprep.subr.bf16.mxu1 %v535_v9 }
  0x44   :  { %490 = vmatpush3.bf16.msra.mxu0 %v535_v9  ;;  %522 = vmatpush3.bf16.msra.mxu1 %v535_v9 }
  0x47   :  { %492 = vmatmul.mubr.bf16.vlgmr.msra.gmra.mrb[0].mxu0 %v538_v10  ;;  %500 = vmatmul.mubr.bf16.vlgmr.msra.gmra.mrb[0].mxu1 %v539_v11 }
  0x48   :  { %495 = vmatprep.mubr.bf16.mxu0 %v540_v12  ;;  %503 = vmatprep.mubr.bf16.mxu1 %v541_v13 }
  0x4f   :  { %496 = vmatmul.mubr.bf16.gmra.mrb[4].mxu0 %v542_v14  ;;  %504 = vmatmul.mubr.bf16.gmra.mrb[4].mxu1 %v543_v15 }
 0x11a   :  { %v493_v16 = vpop.f32.mrb[0].mxu0  ;;  %v501_v17 = vpop.f32.mrb[0].mxu1 }
 0x11b   :  { %v203_v18 = vpop.f32.mrb[1].mxu0  ;;  %v235_v19 = vpop.f32.mrb[1].mxu1 }
 0x11c   :  { %v494_v20 = vpop.f32.mrb[2].mxu0  ;;  %v502_v21 = vpop.f32.mrb[2].mxu1 }
 0x11d   :  { %v420_v22 = vpack.c.bf16 %v494_v20, %v493_v16  ;;  %v440_v23 = vpack.c.bf16 %v502_v21, %v501_v17  ;;  %v206_v24 = vpop.f32.mrb[3].mxu0  ;;  %v238_v25 = vpop.f32.mrb[3].mxu1 }
 0x11e   :  { %v415_v26 = vpack.c.bf16 %v206_v24, %v203_v18  ;;  %v435_v27 = vpack.c.bf16 %v238_v25, %v235_v19 }
 0x11f   :  { %452 = vst [vmem:[#allocation7 + $0x8] sm:$0xff] %v420_v22   ;;  %456 = vst [vmem:[#allocation7 + $0x28] sm:$0xff] %v440_v23  }
 0x120   :  { %416 = vst [vmem:[#allocation7] sm:$0xff] %v415_v26   ;;  %455 = vst [vmem:[#allocation7 + $0x20] sm:$0xff] %v435_v27  }
 0x122   :  { %v497_v28 = vpop.f32.mrb[4].mxu0  ;;  %v505_v29 = vpop.f32.mrb[4].mxu1 }
 0x123   :  { %v219_v30 = vpop.f32.mrb[5].mxu0  ;;  %v251_v31 = vpop.f32.mrb[5].mxu1 }
 0x124   :  { %v498_v32 = vpop.f32.mrb[6].mxu0  ;;  %v506_v33 = vpop.f32.mrb[6].mxu1 }
 0x125   :  { %v430_v34 = vpack.c.bf16 %v498_v32, %v497_v28  ;;  %v450_v35 = vpack.c.bf16 %v506_v33, %v505_v29  ;;  %v222_v36 = vpop.f32.mrb[7].mxu0  ;;  %v254_v37 = vpop.f32.mrb[7].mxu1 }
 0x126   :  { %v425_v38 = vpack.c.bf16 %v222_v36, %v219_v30  ;;  %v445_v39 = vpack.c.bf16 %v254_v37, %v251_v31 }
 0x127   :  { %454 = vst [vmem:[#allocation7 + $0x18] sm:$0xff] %v430_v34   ;;  %458 = vst [vmem:[#allocation7 + $0x38] sm:$0xff] %v450_v35  }
 0x128   :  { %453 = vst [vmem:[#allocation7 + $0x10] sm:$0xff] %v425_v38   ;;  %457 = vst [vmem:[#allocation7 + $0x30] sm:$0xff] %v445_v39  }
 0x129   :  { %599 = shalt.err (!%p596_p6)
}
 0x12a   :  { %s600_s10 = scalar_lea.hbm %s683_s2, 1024 }
 0x12b   :  { %p601_p7 = scmp.ne.s32.totalorder %s683_s2, %s600_s10  ;;  %p604_p8 = scmp.lt.u32.totalorder %s600_s10, %s683_s2 }
 0x12d   :  { %p606_p9 = pnand %p604_p8, %p601_p7 }
 0x12f   :  { %609 = shalt.err (!%p606_p9)
}
 0x130   :  { %357 = dma.vmem_to_hbm [thread:$0]  %s352_s6, 1024, %s683_s2, [#allocation4], %s617_s19, %s617_s19, %s618_s20  }
 0x131   :  { %614 = dma.done.wait [#allocation4], 1024  }
 0x132   :  { %615 = vsyncadd [#allocation4], 4294966272 }
 0x133   :  { %361 = vsyncpa [#allocation3], 1 }
 0x134   :  { %362 = vsyncpa [#allocation6], 1 }
 0x135   :  { %363 = vsyncpa [#allocation4], 1 }

</bundles_post_ra>
